<compile_context>
chip_gen: v7x
topology: tpu7x:2x2x1
jax: 0.10.0
libtpu: 0.0.40
codegen_flags: <defaults>
</compile_context>

<pallas_src>
import functools
import math

import jax
import jax.numpy as jnp
from jax.experimental import pallas as pl
from jax.experimental.pallas import tpu as pltpu


# ----------------------------- kernel bodies ------------------------------ #

@functools.lru_cache(maxsize=None)
def _make_fused_kernel(post_scale, use_bias):
    """sum/mean fused path: (tile_n, K*D) @ (K*D, O_pad) does reduce+project."""

    def _compute(nf, w, b):
        h = jnp.dot(nf, w, preferred_element_type=jnp.float32)
        if post_scale is not None:
            h = h * jnp.float32(post_scale)
        if b is not None:
            h = h + b.astype(jnp.float32)
        return h

    if use_bias:
        def kernel(nf_ref, w_ref, b_ref, o_ref):
            o_ref[...] = _compute(nf_ref[...], w_ref[...],
                                  b_ref[...]).astype(o_ref.dtype)
    else:
        def kernel(nf_ref, w_ref, o_ref):
            o_ref[...] = _compute(nf_ref[...], w_ref[...],
                                  None).astype(o_ref.dtype)
    return kernel


@functools.lru_cache(maxsize=None)
def _make_reduce_kernel(K, D, aggr_method, post_scale, use_bias):
    """reduce-then-matmul path: lane-dense (tile_n, K*D) block, K-1 VPU
    combines over static D-wide lane slices, then (tile_n, D) @ (D, O_pad)."""
    combine = jnp.maximum if aggr_method == "max" else jnp.add

    def _compute(nf, w, b):
        aggr = nf[:, 0:D]
        for k in range(1, K):                      # K is small & static
            aggr = combine(aggr, nf[:, k * D:(k + 1) * D])
        h = jnp.dot(aggr, w, preferred_element_type=jnp.float32)
        if post_scale is not None:
            h = h * jnp.float32(post_scale)
        if b is not None:
            h = h + b.astype(jnp.float32)
        return h

    if use_bias:
        def kernel(nf_ref, w_ref, b_ref, o_ref):
            o_ref[...] = _compute(nf_ref[...], w_ref[...],
                                  b_ref[...]).astype(o_ref.dtype)
    else:
        def kernel(nf_ref, w_ref, o_ref):
            o_ref[...] = _compute(nf_ref[...], w_ref[...],
                                  None).astype(o_ref.dtype)
    return kernel


# ------------------------------- tiling ----------------------------------- #

def _vmem_capacity_bytes():
    try:
        return int(pltpu.get_tpu_info().vmem_capacity_bytes)
    except Exception:
        return 64 << 20   # conservative fallback (v7x per-TC physical VMEM)


def _pick_tile_n(n_rows, row_bytes, vmem_bytes):
    """Node-axis tile: generation-aware nf-buffer budget, >= 4 grid steps."""
    # ~6 MiB per pipelined nf buffer on 128-MiB-VMEM parts (v5e/v6e),
    # ~3 MiB on 64-MiB parts (v7x).
    budget = (6 << 20) if vmem_bytes >= (96 << 20) else (3 << 20)
    tile = budget // max(row_bytes, 1)
    if n_rows >= 64:
        # >= 4 grid steps -> >= 2 steps per TensorCore on 2-TC chips, so the
        # DMA/compute pipeline actually overlaps inside each core.
        tile = min(tile, pl.cdiv(n_rows, 4))
    tile = min(tile, ((n_rows + 7) // 8) * 8)
    tile = max(8, (int(tile) // 8) * 8)
    return tile


# ------------------------------- module ------------------------------------ #

class NeighborAggregatorPallas:
    """Pallas TPU implementation of NeighborAggregator.forward.

    Constant-operand prep (lane padding of weight/bias, K-replication,
    compute-dtype cast) is hoisted here and cached per (K, dtype).
    """

    # Replicated-weight fusion only while it stays memory-bound and its VMEM
    # footprint is small; otherwise fall back to reduce-then-matmul.
    _FUSE_MAX_K_TIMES_OPAD = 1024
    _FUSE_MAX_WEIGHT_BYTES = 2 << 20

    def __init__(self, weight, bias=None, aggr_method="mean",
                 compute_dtype=None):
        if aggr_method not in ("mean", "sum", "max"):
            raise ValueError(
                "Unknown aggr type, expected sum, max, or mean, but got "
                f"{aggr_method}")
        self.aggr_method = aggr_method
        self.compute_dtype = (None if compute_dtype is None
                              else jnp.dtype(compute_dtype))

        D, O = weight.shape
        self.input_dim = D
        self.output_dim = O
        self.o_pad = pl.cdiv(O, 128) * 128   # lane-dense output -> unmasked vst

        w32 = weight.astype(jnp.float32)
        if self.o_pad != O:
            w32 = jnp.pad(w32, ((0, 0), (0, self.o_pad - O)))
        self._w_pad_f32 = w32                 # (D, O_pad), padded cols are zero

        self.use_bias = bias is not None
        self._bias_pad = None
        if self.use_bias:
            b32 = bias.astype(jnp.float32)
            if self.o_pad != O:
                b32 = jnp.pad(b32, (0, self.o_pad - O))
            self._bias_pad = b32.reshape(1, self.o_pad)

        self._plain_w_cache = {}   # dtype name -> (D, O_pad)
        self._fused_w_cache = {}   # (K, dtype name) -> (K*D, O_pad)

    # ---- constant-operand caches (prep hoisted out of the hot path) ----
    def _plain_weight(self, dtype):
        key = jnp.dtype(dtype).name
        if key not in self._plain_w_cache:
            self._plain_w_cache[key] = self._w_pad_f32.astype(dtype)
        return self._plain_w_cache[key]

    def _fused_weight(self, K, dtype):
        key = (K, jnp.dtype(dtype).name)
        if key not in self._fused_w_cache:
            w_rep = jnp.tile(self._w_pad_f32, (K, 1))   # (K*D, O_pad), f32
            self._fused_w_cache[key] = w_rep.astype(dtype)
        return self._fused_w_cache[key]

    def __call__(self, neighbor_feature, tile_n=None):
        N, K, D = neighbor_feature.shape
        if D != self.input_dim:
            raise ValueError(f"expected input_dim={self.input_dim}, got {D}")
        out_dtype = neighbor_feature.dtype
        cdtype = self.compute_dtype or out_dtype

        # Lane-dense view: (N, K*D) is a free, contiguous row-major reshape;
        # the only HBM copy is the optional compute-dtype cast.
        x = neighbor_feature.astype(cdtype).reshape(N, K * D)

        itemsize = jnp.dtype(cdtype).itemsize
        row_bytes = K * D * itemsize
        vmem_bytes = _vmem_capacity_bytes()
        if tile_n is None:
            tile_n = _pick_tile_n(N, row_bytes, vmem_bytes)
        tile_n = max(8, (int(tile_n) // 8) * 8)
        grid_n = pl.cdiv(N, tile_n)    # ragged last block; no wrapper-side pad

        o_pad = self.o_pad
        post_scale = (1.0 / K) if self.aggr_method == "mean" else None

        fuse = (
            self.aggr_method in ("mean", "sum")
            and K * o_pad <= self._FUSE_MAX_K_TIMES_OPAD
            and K * D * o_pad * itemsize <= self._FUSE_MAX_WEIGHT_BYTES
        )

        if fuse:
            w = self._fused_weight(K, cdtype)          # (K*D, O_pad)
            kernel = _make_fused_kernel(post_scale, self.use_bias)
        else:
            w = self._plain_weight(cdtype)             # (D, O_pad)
            kernel = _make_reduce_kernel(K, D, self.aggr_method,
                                         post_scale, self.use_bias)
        w_rows = w.shape[0]
        # Note: a huge plain weight (very large D*O) would additionally want an
        # O-axis grid; typical GraphSAGE dims keep it a few MiB at most.

        # Constant operands: single-buffered (their index_map never changes).
        const_buf = pl.Buffered(1)
        in_specs = [
            pl.BlockSpec((tile_n, K * D), lambda i: (i, 0)),
            pl.BlockSpec((w_rows, o_pad), lambda i: (0, 0),
                         pipeline_mode=const_buf),
        ]
        args = [x, w]
        if self.use_bias:
            in_specs.append(pl.BlockSpec((1, o_pad), lambda i: (0, 0),
                                         pipeline_mode=const_buf))
            args.append(self._bias_pad)

        # VMEM estimate (nf + out double-buffered, constants single-buffered);
        # pass an explicit limit so the default scoped cap never bites.
        out_itemsize = jnp.dtype(out_dtype).itemsize
        est_bytes = (2 * tile_n * row_bytes
                     + w_rows * o_pad * itemsize
                     + (o_pad * 4 if self.use_bias else 0)
                     + 2 * tile_n * o_pad * out_itemsize)
        vmem_limit = int(min(vmem_bytes * 3 // 4,
                             max(32 << 20, est_bytes + (8 << 20))))

        out = pl.pallas_call(
            kernel,
            out_shape=jax.ShapeDtypeStruct((N, o_pad), out_dtype),
            grid_spec=pltpu.PrefetchScalarGridSpec(
                num_scalar_prefetch=0,
                grid=(grid_n,),
                in_specs=in_specs,
                out_specs=pl.BlockSpec((tile_n, o_pad), lambda i: (i, 0)),
            ),
            compiler_params=pltpu.CompilerParams(
                dimension_semantics=("parallel",),
                vmem_limit_bytes=vmem_limit),
        )(*args)

        if o_pad != self.output_dim:
            out = out[:, :self.output_dim]
        return out


# ------------------------- params / reference ------------------------------ #

def init_params(key, input_dim, output_dim, use_bias=False):
    """kaiming_uniform_-style init matching PyTorch shapes/fan convention."""
    # kaiming_uniform_ on a (input_dim, output_dim) tensor: fan_in = output_dim
    fan_in = output_dim
    gain = math.sqrt(2.0)   # default a=0, leaky_relu
    bound = gain * math.sqrt(3.0 / fan_in)
    weight = jax.random.uniform(key, (input_dim, output_dim),
                                minval=-bound, maxval=bound, dtype=jnp.float32)
    bias = jnp.zeros((output_dim,), jnp.float32) if use_bias else None
    return weight, bias


def reference(neighbor_feature, weight, bias=None, aggr_method="mean"):
    if aggr_method == "mean":
        aggr = jnp.mean(neighbor_feature, axis=1)
    elif aggr_method == "sum":
        aggr = jnp.sum(neighbor_feature, axis=1)
    elif aggr_method == "max":
        aggr = jnp.max(neighbor_feature, axis=1)
    else:
        raise ValueError(aggr_method)
    out = aggr @ weight
    if bias is not None:
        out = out + bias
    return out


# --------------------------------- main ------------------------------------ #

if __name__ == "__main__":
    key = jax.random.PRNGKey(0)
    ks = jax.random.split(key, 6)

    # Config 1: tiny, single grid step, fused mean path, O lane-padded to 128.
    N, K, D, O = 8, 4, 32, 16
    nf1 = jax.random.normal(ks[0], (N, K, D), dtype=jnp.float32)
    w1, b1 = init_params(ks[1], D, O, use_bias=False)
    agg1 = NeighborAggregatorPallas(w1, b1, aggr_method="mean")
    out = jax.block_until_ready(agg1(nf1))
    ref = reference(nf1, w1, b1, "mean")
    assert out.shape == (N, O)
    assert jnp.allclose(out, ref, atol=1e-5, rtol=1e-5)

    # Config 2: ragged N (no wrapper padding), multi-step grid, bias, fused
    # sum/mean and the lane-dense slice-reduce "max" path.
    N2, K2, D2, O2 = 300, 8, 64, 48
    nf2 = jax.random.normal(ks[2], (N2, K2, D2), dtype=jnp.float32)
    w2, b2 = init_params(ks[3], D2, O2, use_bias=True)
    for method, b in (("sum", b2), ("mean", None), ("max", b2)):
        agg = NeighborAggregatorPallas(w2, b, aggr_method=method)
        got = jax.block_until_ready(agg(nf2))
        want = reference(nf2, w2, b, method)
        assert got.shape == (N2, O2)
        assert jnp.allclose(got, want, atol=1e-4, rtol=1e-4), method

    # Config 3: larger O -> roofline-conditional fallback to reduce-then-matmul
    # (no K-replicated weight, MXU work not inflated).
    N3, K3, D3, O3 = 64, 4, 128, 384
    nf3 = jax.random.normal(ks[4], (N3, K3, D3), dtype=jnp.float32)
    w3, b3 = init_params(ks[5], D3, O3, use_bias=True)
    for method in ("mean", "sum"):
        agg = NeighborAggregatorPallas(w3, b3, aggr_method=method)
        got = jax.block_until_ready(agg(nf3))
        want = reference(nf3, w3, b3, method)
        assert got.shape == (N3, O3)
        assert jnp.allclose(got, want, atol=1e-4, rtol=1e-4), method

    # Config 2 again with bf16 compute (halved HBM traffic), f32 accumulation.
    agg_bf16 = NeighborAggregatorPallas(w2, b2, aggr_method="mean",
                                        compute_dtype=jnp.bfloat16)
    got = jax.block_until_ready(agg_bf16(nf2))
    want = reference(nf2, w2, b2, "mean")
    assert got.dtype == nf2.dtype
    assert jnp.allclose(got, want, atol=5e-2, rtol=5e-2)

    print("KERNEL_OK")
</pallas_src>

<mosaic_0001>
module attributes {stable_mosaic.version = 11 : i64} {
  func.func @kernel(%arg0: i32, %arg1: memref<8x128xf32, #tpu.memory_space<vmem>>, %arg2: memref<128x128xf32, #tpu.memory_space<vmem>>, %arg3: memref<8x128xf32, #tpu.memory_space<vmem>>) attributes {dimension_semantics = [#tpu.dimension_semantics<parallel>], iteration_bounds = array<i64: 1>, scalar_prefetch = 0 : i64, scratch_operands = 0 : i64, tpu.core_type = #tpu.core_type<tc>, window_params = [{transform_indices = @transform_0, window_bounds = array<i64: 8, 128>}, {pipeline_mode = #tpu.pipeline_mode<synchronous>, transform_indices = @transform_1, window_bounds = array<i64: 128, 128>}, {transform_indices = @transform_2, window_bounds = array<i64: 8, 128>}]} {
    %c0 = arith.constant 0 : index
    %c0_0 = arith.constant 0 : index
    %0 = vector.load %arg1[%c0, %c0_0] : memref<8x128xf32, #tpu.memory_space<vmem>>, vector<8x128xf32>
    %c0_1 = arith.constant 0 : index
    %c0_2 = arith.constant 0 : index
    %1 = vector.load %arg2[%c0_1, %c0_2] : memref<128x128xf32, #tpu.memory_space<vmem>>, vector<128x128xf32>
    %cst = arith.constant dense<0.000000e+00> : vector<8x128xf32>
    %2 = tpu.matmul %0, %1, %cst {dimension_numbers = #tpu.dot_dimension_numbers<[1], [0], [0], [1], [0, 0, 1, 1], [], []>} : vector<8x128xf32>, vector<128x128xf32>, vector<8x128xf32> -> vector<8x128xf32>
    %cst_3 = arith.constant 2.500000e-01 : f32
    %3 = vector.broadcast %cst_3 : f32 to vector<8x128xf32>
    %4 = arith.mulf %2, %3 : vector<8x128xf32>
    %c0_4 = arith.constant 0 : index
    %c0_5 = arith.constant 0 : index
    %5 = vector.load %arg3[%c0_4, %c0_5] : memref<8x128xf32, #tpu.memory_space<vmem>>, vector<8x128xf32>
    tpu.vector_store %arg3[%c0_4, %c0_5], %4 {strides = array<i32>} : memref<8x128xf32, #tpu.memory_space<vmem>>, vector<8x128xf32>,
    return
  }
  func.func @transform_0(%arg0: i32) -> (i32, i32) {
    %c0_i32 = arith.constant 0 : i32
    %c0_i32_0 = arith.constant 0 : i32
    return %arg0, %c0_i32 : i32, i32
  }
  func.func @transform_1(%arg0: i32) -> (i32, i32) {
    %c0_i32 = arith.constant 0 : i32
    %c0_i32_0 = arith.constant 0 : i32
    %c0_i32_1 = arith.constant 0 : i32
    return %c0_i32, %c0_i32_0 : i32, i32
  }
  func.func @transform_2(%arg0: i32) -> (i32, i32) {
    %c0_i32 = arith.constant 0 : i32
    %c0_i32_0 = arith.constant 0 : i32
    return %arg0, %c0_i32 : i32, i32
  }
}

</mosaic_0001>

<bundles_post_ra>
// kernel: tpu_custom_call.1
= control target key start
LH: loop header
LB: loop body
LE: loop exit
PB: predicated region body
PF: predicated region fallthrough
CT: control target
= control target key end

     0   :  { %7 = vsyncpa [#allocation3], 0  ;;  %s365_s0 = inlined_call_operand.hbm [shape: f32[8,128], index: 0, kind: input, shape index: {}]   ;;  %s366_s1 = inlined_call_operand.hbm [shape: f32[128,128], index: 1, kind: input, shape index: {}]   ;;  %s367_s2 = inlined_call_operand.hbm [shape: f32[8,128], index: 2, kind: output, shape index: {}]  }
   0x1   :  { %8 = vsyncpa [#allocation6], 0 }
   0x2   :  { %9 = vsyncpa [#allocation4], 0  ;;  %s299_s9 = smov [#allocation2]   ;;  %s300_s11 = smov [#allocation5]  }
   0x3   :  { %s16_s10 = sshll.u32 %s299_s9, 4  ;;  %s25_s12 = sshll.u32 %s300_s11, 4  ;;  %s17_s10 = int_to_ptr.vmem [resolvable:$true] %s16_s10  ;;  %s322_s12 = int_to_ptr.vmem [resolvable:$true] %s25_s12 }
   0x4   :  { %s227_s15 = scalar_lea.hbm %s365_s0, 128 }
   0x5   :  { %p228_p0 = scmp.ne.s32.totalorder %s365_s0, %s227_s15  ;;  %p231_p1 = scmp.lt.u32.totalorder %s227_s15, %s365_s0 }
   0x7   :  { %p233_p2 = pnand %p231_p1, %p228_p0 }
   0x9   :  { %236 = shalt.err (!%p233_p2)
}
   0xa   :  { %s237_s20 = scalar_lea.vmem %s17_s10, 128  ;;  %p242_p4 = scmp.lt.s32.totalorder %s17_s10, %s17_s10 }
   0xb   :  { %p238_p3 = scmp.ne.s32.totalorder %s17_s10, %s237_s20  ;;  %p243_p5 = scmp.lt.s32.totalorder %s237_s20, %s237_s20 }
   0xd   :  { %p244_p6 = por %p243_p5, %p242_p4 }
   0xf   :  { %p245_p7 = pnand %p244_p6, %p238_p3 }
  0x11   :  { %248 = shalt.err (!%p245_p7)
}
  0x12   :  { %19 = dma.hbm_to_vmem [thread:$0]  %s365_s0, 128, %s17_s10, [#allocation3]  }
  0x13   :  { %s249_s25 = scalar_lea.hbm %s366_s1, 2048 }
  0x14   :  { %p250_p8 = scmp.ne.s32.totalorder %s366_s1, %s249_s25  ;;  %p253_p9 = scmp.lt.u32.totalorder %s249_s25, %s366_s1 }
  0x16   :  { %p255_p10 = pnand %p253_p9, %p250_p8 }
  0x18   :  { %258 = shalt.err (!%p255_p10)
}
  0x19   :  { %s259_s30 = scalar_lea.vmem %s322_s12, 2048  ;;  %p264_p12 = scmp.lt.s32.totalorder %s322_s12, %s322_s12 }
  0x1a   :  { %p260_p11 = scmp.ne.s32.totalorder %s322_s12, %s259_s30  ;;  %p265_p13 = scmp.lt.s32.totalorder %s259_s30, %s259_s30 }
  0x1c   :  { %p266_p0 = por %p265_p13, %p264_p12 }
  0x1e   :  { %p267_p1 = pnand %p266_p0, %p260_p11 }
  0x20   :  { %270 = shalt.err (!%p267_p1)
}
  0x21   :  { %s301_s0 = smov 128   ;;  %s302_s3 = smov 8  }
  0x22   :  { %31 = dma.hbm_to_vmem [thread:$0]  %s366_s1, 2048, %s322_s12, [#allocation6], %s301_s0, %s301_s0, %s302_s3  }
  0x23   :  { %293 = dma.done.wait [#allocation3], 128  }
  0x24   :  { %294 = vsyncadd [#allocation3], 4294967168 }
  0x25   :  { %295 = dma.done.wait [#allocation6], 2048  }
  0x26   :  { %296 = vsyncadd [#allocation6], 4294965248  ;;  %v303_v0 = vmov 0.0|0.0   ;;  %vm304_vm0 = vmmov 0   ;;  %v305_v1 = vmov 0.0   ;;  %v39_v2 = vld [vmem:[#allocation5] sm:$0xff] }
  0x27   :  { %195 = vmatprep.subr.bf16.mxu0 %v303_v0  ;;  %192 = vmatprep.mubr.msk.f32.mxu0 %vm304_vm0, %v305_v1  ;;  %v40_v3 = vld [vmem:[#allocation5 + $0x8] sm:$0xff]  ;;  %v41_v4 = vld [vmem:[#allocation5 + $0x10] sm:$0xff]  ;;  %v42_v6 = vld [vmem:[#allocation5 + $0x18] sm:$0xff]  ;;  %s306_s1 = smov [#allocation7]  }
  0x28   :  { %v196_v5 = vpack.c.bf16 %v40_v3, %v39_v2  ;;  %v199_v7 = vpack.c.bf16 %v42_v6, %v41_v4  ;;  %v43_v8 = vld [vmem:[#allocation5 + $0x20] sm:$0xff]  ;;  %v44_v9 = vld [vmem:[#allocation5 + $0x28] sm:$0xff]  ;;  %v45_v11 = vld [vmem:[#allocation5 + $0x30] sm:$0xff]  ;;  %s133_s6 = sshll.u32 %s306_s1, 4  ;;  %s134_s6 = int_to_ptr.vmem [resolvable:$true] %s133_s6 }
  0x29   :  { %v202_v10 = vpack.c.bf16 %v44_v9, %v43_v8  ;;  %v46_v12 = vld [vmem:[#allocation5 + $0x38] sm:$0xff]  ;;  %v47_v14 = vld [vmem:[#allocation5 + $0x40] sm:$0xff]  ;;  %v48_v15 = vld [vmem:[#allocation5 + $0x48] sm:$0xff]  ;;  %s271_s7 = scalar_lea.vmem %s134_s6, 128  ;;  %p276_p3 = scmp.lt.s32.totalorder %s134_s6, %s134_s6 }
  0x2a   :  { %197 = vmatpush3.bf16.msra.mxu0 %v196_v5  ;;  %v205_v13 = vpack.c.bf16 %v46_v12, %v45_v11  ;;  %v208_v16 = vpack.c.bf16 %v48_v15, %v47_v14  ;;  %v49_v17 = vld [vmem:[#allocation5 + $0x50] sm:$0xff]  ;;  %v50_v18 = vld [vmem:[#allocation5 + $0x58] sm:$0xff]  ;;  %v51_v20 = vld [vmem:[#allocation5 + $0x60] sm:$0xff]  ;;  %p272_p2 = scmp.ne.s32.totalorder %s134_s6, %s271_s7  ;;  %p277_p4 = scmp.lt.s32.totalorder %s271_s7, %s271_s7 }
  0x2b   :  { %198 = vmatprep.subr.bf16.mxu0 %v303_v0  ;;  %v211_v19 = vpack.c.bf16 %v50_v18, %v49_v17  ;;  %v52_v21 = vld [vmem:[#allocation5 + $0x68] sm:$0xff]  ;;  %v53_v23 = vld [vmem:[#allocation5 + $0x70] sm:$0xff]  ;;  %v54_v24 = vld [vmem:[#allocation5 + $0x78] sm:$0xff] }
  0x2c   :  { %v214_v22 = vpack.c.bf16 %v52_v21, %v51_v20  ;;  %v217_v25 = vpack.c.bf16 %v54_v24, %v53_v23  ;;  %v38_v26 = vld [vmem:[#allocation2] sm:$0xff]  ;;  %p278_p5 = por %p277_p4, %p276_p3 }
  0x2e   :  { %200 = vmatpush3.bf16.msra.mxu0 %v199_v7  ;;  %p279_p6 = pnand %p278_p5, %p272_p2 }
  0x2f   :  { %201 = vmatprep.subr.bf16.mxu0 %v303_v0 }
  0x32   :  { %203 = vmatpush3.bf16.msra.mxu0 %v202_v10 }
  0x33   :  { %204 = vmatprep.subr.bf16.mxu0 %v303_v0 }
  0x36   :  { %206 = vmatpush3.bf16.msra.mxu0 %v205_v13 }
  0x37   :  { %207 = vmatprep.subr.bf16.mxu0 %v303_v0 }
  0x3a   :  { %209 = vmatpush3.bf16.msra.mxu0 %v208_v16 }
  0x3b   :  { %210 = vmatprep.subr.bf16.mxu0 %v303_v0 }
  0x3e   :  { %212 = vmatpush3.bf16.msra.mxu0 %v211_v19 }
  0x3f   :  { %213 = vmatprep.subr.bf16.mxu0 %v303_v0 }
  0x42   :  { %215 = vmatpush3.bf16.msra.mxu0 %v214_v22 }
  0x43   :  { %216 = vmatprep.subr.bf16.mxu0 %v303_v0 }
  0x46   :  { %218 = vmatpush3.bf16.msra.mxu0 %v217_v25 }
  0x49   :  { %193 = vmatmul.mubr.f32.vlgmr.msra.gmra.mrb[0].mxu0 %v38_v26 }
 0x11c   :  { %v121_v27 = vpop.f32.mrb[0].mxu0 }
 0x11d   :  { %v125_v28 = vmul.f32 0.25, %v121_v27  ;;  %v194_v29 = vpop.f32.mrb[1].mxu0 }
 0x11f   :  { %126 = vst [vmem:[#allocation7] sm:$0xff] %v125_v28 }
 0x120   :  { %282 = shalt.err (!%p279_p6)
}
 0x121   :  { %s283_s10 = scalar_lea.hbm %s367_s2, 128 }
 0x122   :  { %p284_p7 = scmp.ne.s32.totalorder %s367_s2, %s283_s10  ;;  %p287_p8 = scmp.lt.u32.totalorder %s283_s10, %s367_s2 }
 0x124   :  { %p289_p9 = pnand %p287_p8, %p284_p7 }
 0x126   :  { %292 = shalt.err (!%p289_p9)
}
 0x127   :  { %136 = dma.vmem_to_hbm [thread:$0]  %s134_s6, 128, %s367_s2, [#allocation4]  }
 0x128   :  { %297 = dma.done.wait [#allocation4], 128  }
 0x129   :  { %298 = vsyncadd [#allocation4], 4294967168 }
 0x12a   :  { %140 = vsyncpa [#allocation3], 1 }
 0x12b   :  { %141 = vsyncpa [#allocation6], 1 }
 0x12c   :  { %142 = vsyncpa [#allocation4], 1 }

</bundles_post_ra>
